<compile_context>
chip_gen: v5e
topology: v5e:2x2
jax: 0.10.0
libtpu: 0.0.40
codegen_flags: <defaults>
</compile_context>

<pallas_src>
import inspect

import jax
import jax.numpy as jnp
from jax.experimental import pallas as pl
from jax.experimental.pallas import tpu as pltpu

LANE = 128


def _round_up(v, m):
    return (v + m - 1) // m * m


def _has_pipeline_mode():
    if not hasattr(pl, "Buffered"):
        return False
    try:
        return "pipeline_mode" in inspect.signature(pl.BlockSpec).parameters
    except (TypeError, ValueError):
        return False


_HAS_PIPELINE_MODE = _has_pipeline_mode()


def _vmem_budget_bytes():
    """Usable VMEM budget (bytes); conservative fallback = v7x per-core VMEM."""
    cap = None
    if hasattr(pltpu, "get_tpu_info"):
        try:
            cap = getattr(pltpu.get_tpu_info(), "vmem_capacity_bytes", None)
        except Exception:  # hardware query only; never masks kernel errors
            cap = None
    if not cap:
        cap = 64 * 1024 * 1024
    return int(cap) * 3 // 4


# ----------------------------------------------------------------------------
# Kernels
# ----------------------------------------------------------------------------
def _make_resident_kernel(dim_in, mask_k):
    """Both layers in one step; W1^T / W2^T fully resident in VMEM."""

    def kernel(x_ref, w1_ref, b1_ref, w2_ref, b2_ref, o_ref):
        x = x_ref[...]
        if mask_k:
            # Zero the garbage K lanes (d_p > dim_in) of the partially
            # out-of-bounds x block; keeps the matmul exact without an HBM pad.
            col = jax.lax.broadcasted_iota(jnp.int32, x.shape, 1)
            x = jnp.where(col < dim_in, x, 0)
        xf = x.astype(jnp.float32)

        h1 = jnp.tanh(
            jnp.dot(x.astype(w1_ref.dtype), w1_ref[...],
                    preferred_element_type=jnp.float32) + b1_ref[...])
        h2 = jnp.tanh(
            jnp.dot(h1.astype(w2_ref.dtype), w2_ref[...],
                    preferred_element_type=jnp.float32) + b2_ref[...])

        o_ref[...] = (h2 + xf).astype(o_ref.dtype)

    return kernel


def _make_width_tiled_kernel(dim_in, mask_k):
    """Hidden width tiled over grid axis 1 with an f32 accumulator scratch."""

    def kernel(x_ref, w1_ref, b1_ref, w2_ref, b2_ref, o_ref, acc_ref):
        j = pl.program_id(1)

        @pl.when(j == 0)
        def _init():
            acc_ref[...] = jnp.zeros_like(acc_ref)

        x = x_ref[...]
        if mask_k:
            col = jax.lax.broadcasted_iota(jnp.int32, x.shape, 1)
            x = jnp.where(col < dim_in, x, 0)
        xf = x.astype(jnp.float32)

        h1 = jnp.tanh(
            jnp.dot(x.astype(w1_ref.dtype), w1_ref[...],
                    preferred_element_type=jnp.float32) + b1_ref[...])
        acc_ref[...] += jnp.dot(h1.astype(w2_ref.dtype), w2_ref[...],
                                preferred_element_type=jnp.float32)

        @pl.when(j == pl.num_programs(1) - 1)
        def _finalize():
            o_ref[...] = (jnp.tanh(acc_ref[...] + b2_ref[...]) + xf
                          ).astype(o_ref.dtype)

    return kernel


# ----------------------------------------------------------------------------
# VMEM footprint estimates (bytes)
# ----------------------------------------------------------------------------
def _resident_footprint(tile_m, d_p, w_p, x_bytes, mxu_bytes, wbuf):
    weights = 2 * d_p * w_p * mxu_bytes * wbuf + (w_p + d_p) * 4 * wbuf
    io = 2 * tile_m * d_p * x_bytes * 2            # x + out, double-buffered
    tmp = tile_m * (w_p + 2 * d_p) * 4             # h1 / h2 / residual temporaries
    return weights + io + tmp


def _tiled_footprint(tile_m, tw, d_p, x_bytes, mxu_bytes):
    weights = 2 * (2 * d_p * tw * mxu_bytes + tw * 4) + d_p * 4  # streamed W/b1, resident b2
    io = 2 * tile_m * d_p * x_bytes * 2
    acc = tile_m * d_p * 4
    tmp = tile_m * (tw + d_p) * 4
    return weights + io + acc + tmp


# ----------------------------------------------------------------------------
# pallas_call wrappers
# ----------------------------------------------------------------------------
def _call_resident(x2d, w1t, b1r, w2t, b2r, *, dim_in, tile_m,
                   single_buffer_weights, vmem_limit):
    n = x2d.shape[0]
    d_p, w_p = w1t.shape
    mask_k = d_p != dim_in

    wkw = dict(pipeline_mode=pl.Buffered(1)) if single_buffer_weights else {}

    return pl.pallas_call(
        _make_resident_kernel(dim_in, mask_k),
        out_shape=jax.ShapeDtypeStruct((n, dim_in), x2d.dtype),
        grid_spec=pltpu.PrefetchScalarGridSpec(
            num_scalar_prefetch=0,
            grid=(pl.cdiv(n, tile_m),),
            in_specs=[
                pl.BlockSpec((tile_m, d_p), lambda i: (i, 0)),        # x (streamed)
                pl.BlockSpec((d_p, w_p), lambda i: (0, 0), **wkw),    # W1^T (resident)
                pl.BlockSpec((1, w_p), lambda i: (0, 0), **wkw),      # b1
                pl.BlockSpec((w_p, d_p), lambda i: (0, 0), **wkw),    # W2^T (resident)
                pl.BlockSpec((1, d_p), lambda i: (0, 0), **wkw),      # b2
            ],
            out_specs=pl.BlockSpec((tile_m, d_p), lambda i: (i, 0)),
        ),
        compiler_params=pltpu.CompilerParams(
            dimension_semantics=("parallel",),     # batch axis -> megacore / 2 TCs
            vmem_limit_bytes=vmem_limit,
        ),
    )(x2d, w1t, b1r, w2t, b2r)


def _call_width_tiled(x2d, w1t, b1r, w2t, b2r, *, dim_in, tile_m, tw,
                      single_buffer_bias, vmem_limit):
    n = x2d.shape[0]
    d_p, w_p = w1t.shape
    mask_k = d_p != dim_in

    bkw = dict(pipeline_mode=pl.Buffered(1)) if single_buffer_bias else {}

    return pl.pallas_call(
        _make_width_tiled_kernel(dim_in, mask_k),
        out_shape=jax.ShapeDtypeStruct((n, dim_in), x2d.dtype),
        grid_spec=pltpu.PrefetchScalarGridSpec(
            num_scalar_prefetch=0,
            grid=(pl.cdiv(n, tile_m), w_p // tw),
            in_specs=[
                pl.BlockSpec((tile_m, d_p), lambda i, j: (i, 0)),      # x (reused over j)
                pl.BlockSpec((d_p, tw), lambda i, j: (0, j)),          # W1^T slice (streamed)
                pl.BlockSpec((1, tw), lambda i, j: (0, j)),            # b1 slice
                pl.BlockSpec((tw, d_p), lambda i, j: (j, 0)),          # W2^T slice (streamed)
                pl.BlockSpec((1, d_p), lambda i, j: (0, 0), **bkw),    # b2 (resident)
            ],
            out_specs=pl.BlockSpec((tile_m, d_p), lambda i, j: (i, 0)),
            scratch_shapes=[pltpu.VMEM((tile_m, d_p), jnp.float32)],   # layer-2 accumulator
        ),
        compiler_params=pltpu.CompilerParams(
            dimension_semantics=("parallel", "arbitrary"),
            vmem_limit_bytes=vmem_limit,
        ),
    )(x2d, w1t, b1r, w2t, b2r)


# ----------------------------------------------------------------------------
# Public wrapper
# ----------------------------------------------------------------------------
def residual_feedforward_block(x, w1, b1, w2, b2, *, tile_m=512, mxu_dtype=None,
                               width_tile=None, small_problem_bypass=True):
    """y = tanh(tanh(x @ w1.T + b1) @ w2.T + b2) + x   (PyTorch nn.Linear layout)

    x : (..., dim_in)      w1: (width, dim_in)   b1: (width,)
    w2: (dim_in, width)    b2: (dim_in,)

    mxu_dtype:  dtype of the matmul operands.  Defaults to x.dtype;
                jnp.bfloat16 is recommended on v5e as well as v6e/v7x when the
                tolerance allows (accumulation / bias / tanh / residual are f32).
    width_tile: force the width-tiled (bounded-VMEM) kernel with this hidden
                tile (rounded to 128); None = auto (resident weights when they
                fit the VMEM budget, width-tiled otherwise, e.g. on v7x).
    small_problem_bypass: use plain XLA below a size threshold where the
                pallas_call fixed cost dominates.
    """
    x = jnp.asarray(x)
    w1 = jnp.asarray(w1)
    b1 = jnp.asarray(b1)
    w2 = jnp.asarray(w2)
    b2 = jnp.asarray(b2)

    orig_shape = x.shape
    dim_in = orig_shape[-1]
    width = w1.shape[0]
    x2d = x.reshape(-1, dim_in)
    n = x2d.shape[0]

    if mxu_dtype is None:
        mxu_dtype = x.dtype
    mxu_dtype = jnp.dtype(mxu_dtype)
    x_bytes = jnp.dtype(x.dtype).itemsize
    mxu_bytes = mxu_dtype.itemsize

    # Small-problem bypass: everything would be padded to one 128-lane tile and
    # a single grid step; XLA is faster there.
    if small_problem_bypass and (n < 64 or (dim_in < 128 and width < 128)):
        h1 = jnp.tanh(x2d @ w1.T + b1)
        h2 = jnp.tanh(h1 @ w2.T + b2)
        return (h2 + x2d).reshape(orig_shape)

    # Sublane multiple depends on the x dtype (f32: 8, bf16: 16, int8/fp8: 32).
    sub = max(8, 32 // x_bytes)

    # Row tile: cap by the batch, round to the sublane multiple, and keep >= 2
    # grid steps when possible so the "parallel" batch axis can shard across
    # both v7x TensorCores.
    tile_m = max(sub, _round_up(min(tile_m, _round_up(n, sub)), sub))
    if pl.cdiv(n, tile_m) < 2 and n > sub:
        tile_m = _round_up(pl.cdiv(n, 2), sub)

    d_p = _round_up(dim_in, LANE)
    w_p = _round_up(width, LANE)
    budget = _vmem_budget_bytes()

    def _plan(single_buffer_weights):
        """Returns (use_tiled, tm, tw, w_pad, vmem_limit)."""
        wbuf = 1 if single_buffer_weights else 2
        tm = tile_m
        if width_tile is not None:
            use_tiled = True
            tw = min(_round_up(int(width_tile), LANE), w_p)
        else:
            use_tiled = False
            tw = w_p
            # Shrink the row tile (not below 128 rows) before giving up on
            # fully-resident weights.
            while (_resident_footprint(tm, d_p, w_p, x_bytes, mxu_bytes, wbuf)
                   > budget and tm > max(sub, 128)):
                tm = max(sub, _round_up(tm // 2, sub))
            if (_resident_footprint(tm, d_p, w_p, x_bytes, mxu_bytes, wbuf)
                    > budget and w_p > LANE):
                use_tiled = True
                tw = min(w_p, 4 * LANE)
        if use_tiled:
            while (_tiled_footprint(tm, tw, d_p, x_bytes, mxu_bytes) > budget
                   and tw > LANE):
                tw = max(LANE, _round_up(tw // 2, LANE))
            while (_tiled_footprint(tm, tw, d_p, x_bytes, mxu_bytes) > budget
                   and tm > sub):
                tm = max(sub, _round_up(tm // 2, sub))
            w_pad = _round_up(width, tw)                 # exact width blocks
            fp = _tiled_footprint(tm, tw, d_p, x_bytes, mxu_bytes)
        else:
            w_pad = w_p
            fp = _resident_footprint(tm, d_p, w_p, x_bytes, mxu_bytes, wbuf)
        vmem_limit = int(min(max(fp * 13 // 10 + (2 << 20), 16 << 20), budget))
        return use_tiled, tm, tw, w_pad, vmem_limit

    def _run(single_buffer_weights):
        use_tiled, tm, tw, w_pad, vmem_limit = _plan(single_buffer_weights)
        # Pad only the (small) weights / biases.  Exact: padded hidden units
        # are tanh(0) = 0, padded W2^T rows are 0, and padded output columns
        # are never stored (out-of-bounds stores are dropped).
        w1t = jnp.pad(w1.astype(mxu_dtype).T,
                      ((0, d_p - dim_in), (0, w_pad - width)))
        w2t = jnp.pad(w2.astype(mxu_dtype).T,
                      ((0, w_pad - width), (0, d_p - dim_in)))
        b1r = jnp.pad(b1.astype(jnp.float32), (0, w_pad - width)).reshape(1, w_pad)
        b2r = jnp.pad(b2.astype(jnp.float32), (0, d_p - dim_in)).reshape(1, d_p)

        if use_tiled:
            y2d = _call_width_tiled(
                x2d, w1t, b1r, w2t, b2r, dim_in=dim_in, tile_m=tm, tw=tw,
                single_buffer_bias=single_buffer_weights, vmem_limit=vmem_limit)
        else:
            y2d = _call_resident(
                x2d, w1t, b1r, w2t, b2r, dim_in=dim_in, tile_m=tm,
                single_buffer_weights=single_buffer_weights,
                vmem_limit=vmem_limit)
        return y2d.reshape(orig_shape)

    if _HAS_PIPELINE_MODE:
        try:
            return _run(True)
        except Exception:
            # pl.Buffered(1) rejected by this Pallas build: re-plan with
            # double-buffered weights (footprint recomputed accordingly) and
            # retry once.  Genuine lowering errors re-raise from this attempt.
            return _run(False)
    return _run(False)


def _reference(x, w1, b1, w2, b2):
    h1 = jnp.tanh(x @ w1.T + b1)
    h2 = jnp.tanh(h1 @ w2.T + b2)
    return h2 + x


if __name__ == "__main__":
    key = jax.random.PRNGKey(0)
    k_x, k_w1, k_b1, k_w2, k_b2, k_x2, k_p = jax.random.split(key, 7)

    # Small shapes consistent with the module (dim_in=32, width=64).
    N, DIM_IN, WIDTH = 16, 32, 64
    x = jax.random.normal(k_x, (N, DIM_IN), dtype=jnp.float32)
    w1 = jax.random.normal(k_w1, (WIDTH, DIM_IN), dtype=jnp.float32) * 0.1
    b1 = jax.random.normal(k_b1, (WIDTH,), dtype=jnp.float32) * 0.1
    w2 = jax.random.normal(k_w2, (DIM_IN, WIDTH), dtype=jnp.float32) * 0.1
    b2 = jax.random.normal(k_b2, (DIM_IN,), dtype=jnp.float32) * 0.1
    y_ref = _reference(x, w1, b1, w2, b2)

    # 1) Resident-weight Pallas kernel (bypass disabled so the kernel runs at
    #    this small demo shape); full-f32 path matches the PyTorch numerics.
    y = jax.block_until_ready(residual_feedforward_block(
        x, w1, b1, w2, b2, small_problem_bypass=False))
    assert y.shape == (N, DIM_IN), "wrong output shape"
    assert jnp.allclose(y, y_ref, atol=1e-5, rtol=1e-5), "resident f32 mismatch"

    # 2) bf16 MXU-operand fast path (v5e/v6e/v7x); accumulation stays f32.
    y_bf16 = jax.block_until_ready(residual_feedforward_block(
        x, w1, b1, w2, b2, mxu_dtype=jnp.bfloat16, small_problem_bypass=False))
    assert jnp.allclose(y_bf16, y_ref, atol=5e-2, rtol=5e-2), "bf16 mismatch"

    # 3) Width-tiled kernel + ragged batch + non-128 dim_in (exercises the
    #    v7x bounded-VMEM variant, the K-lane mask and OOB-clipped row tiles).
    N2, DIM2, WID2 = 50, 96, 320
    x2 = jax.random.normal(k_x2, (N2, DIM2), dtype=jnp.float32)
    p1, p2, p3, p4 = jax.random.split(k_p, 4)
    w1b = jax.random.normal(p1, (WID2, DIM2), dtype=jnp.float32) * 0.1
    b1b = jax.random.normal(p2, (WID2,), dtype=jnp.float32) * 0.1
    w2b = jax.random.normal(p3, (DIM2, WID2), dtype=jnp.float32) * 0.1
    b2b = jax.random.normal(p4, (DIM2,), dtype=jnp.float32) * 0.1
    y2_ref = _reference(x2, w1b, b1b, w2b, b2b)

    y2_res = jax.block_until_ready(residual_feedforward_block(
        x2, w1b, b1b, w2b, b2b, small_problem_bypass=False))
    assert jnp.allclose(y2_res, y2_ref, atol=1e-5, rtol=1e-5), "ragged resident mismatch"

    y2_tiled = jax.block_until_ready(residual_feedforward_block(
        x2, w1b, b1b, w2b, b2b, width_tile=128, small_problem_bypass=False))
    assert jnp.allclose(y2_tiled, y2_ref, atol=1e-5, rtol=1e-5), "width-tiled mismatch"

    # 4) Default small-problem bypass (plain XLA) still matches.
    y_bp = jax.block_until_ready(residual_feedforward_block(x, w1, b1, w2, b2))
    assert jnp.allclose(y_bp, y_ref, atol=1e-5, rtol=1e-5), "bypass mismatch"

    print("KERNEL_OK")
</pallas_src>

<mosaic_0001>
module attributes {stable_mosaic.version = 11 : i64} {
  func.func @kernel(%arg0: i32, %arg1: memref<8x128xf32, #tpu.memory_space<vmem>>, %arg2: memref<128x128xf32, #tpu.memory_space<vmem>>, %arg3: memref<1x128xf32, #tpu.memory_space<vmem>>, %arg4: memref<128x128xf32, #tpu.memory_space<vmem>>, %arg5: memref<1x128xf32, #tpu.memory_space<vmem>>, %arg6: memref<8x128xf32, #tpu.memory_space<vmem>>) attributes {dimension_semantics = [#tpu.dimension_semantics<parallel>], iteration_bounds = array<i64: 2>, scalar_prefetch = 0 : i64, scratch_operands = 0 : i64, tpu.core_type = #tpu.core_type<tc>, window_params = [{transform_indices = @transform_0, window_bounds = array<i64: 8, 128>}, {pipeline_mode = #tpu.pipeline_mode<synchronous>, transform_indices = @transform_1, window_bounds = array<i64: 128, 128>}, {pipeline_mode = #tpu.pipeline_mode<synchronous>, transform_indices = @transform_2, window_bounds = array<i64: 1, 128>}, {pipeline_mode = #tpu.pipeline_mode<synchronous>, transform_indices = @transform_3, window_bounds = array<i64: 128, 128>}, {pipeline_mode = #tpu.pipeline_mode<synchronous>, transform_indices = @transform_4, window_bounds = array<i64: 1, 128>}, {transform_indices = @transform_5, window_bounds = array<i64: 8, 128>}]} {
    %c0 = arith.constant 0 : index
    %c0_0 = arith.constant 0 : index
    %0 = vector.load %arg1[%c0, %c0_0] : memref<8x128xf32, #tpu.memory_space<vmem>>, vector<8x128xf32>
    %1 = tpu.iota {dimensions = array<i32: 1>} : vector<8x128xi32>
    %c32_i32 = arith.constant 32 : i32
    %2 = vector.broadcast %c32_i32 : i32 to vector<8x128xi32>
    %3 = arith.cmpi slt, %1, %2 : vector<8x128xi32>
    %c0_i32 = arith.constant 0 : i32
    %4 = arith.sitofp %c0_i32 : i32 to f32
    %5 = vector.broadcast %4 : f32 to vector<8x128xf32>
    %6 = arith.select %3, %0, %5 : vector<8x128xi1>, vector<8x128xf32>
    %c0_1 = arith.constant 0 : index
    %c0_2 = arith.constant 0 : index
    %7 = vector.load %arg2[%c0_1, %c0_2] : memref<128x128xf32, #tpu.memory_space<vmem>>, vector<128x128xf32>
    %cst = arith.constant dense<0.000000e+00> : vector<8x128xf32>
    %8 = tpu.matmul %6, %7, %cst {dimension_numbers = #tpu.dot_dimension_numbers<[1], [0], [0], [1], [0, 0, 1, 1], [], []>} : vector<8x128xf32>, vector<128x128xf32>, vector<8x128xf32> -> vector<8x128xf32>
    %c0_3 = arith.constant 0 : index
    %c0_4 = arith.constant 0 : index
    %9 = vector.load %arg3[%c0_3, %c0_4] : memref<1x128xf32, #tpu.memory_space<vmem>>, vector<1x128xf32>
    %10 = vector.broadcast %9 : vector<1x128xf32> to vector<8x128xf32>
    %11 = arith.addf %8, %10 : vector<8x128xf32>
    %12 = math.tanh %11 : vector<8x128xf32>
    %c0_5 = arith.constant 0 : index
    %c0_6 = arith.constant 0 : index
    %13 = vector.load %arg4[%c0_5, %c0_6] : memref<128x128xf32, #tpu.memory_space<vmem>>, vector<128x128xf32>
    %cst_7 = arith.constant dense<0.000000e+00> : vector<8x128xf32>
    %14 = tpu.matmul %12, %13, %cst_7 {dimension_numbers = #tpu.dot_dimension_numbers<[1], [0], [0], [1], [0, 0, 1, 1], [], []>} : vector<8x128xf32>, vector<128x128xf32>, vector<8x128xf32> -> vector<8x128xf32>
    %c0_8 = arith.constant 0 : index
    %c0_9 = arith.constant 0 : index
    %15 = vector.load %arg5[%c0_8, %c0_9] : memref<1x128xf32, #tpu.memory_space<vmem>>, vector<1x128xf32>
    %16 = vector.broadcast %15 : vector<1x128xf32> to vector<8x128xf32>
    %17 = arith.addf %14, %16 : vector<8x128xf32>
    %18 = math.tanh %17 : vector<8x128xf32>
    %19 = arith.addf %18, %6 : vector<8x128xf32>
    %c0_10 = arith.constant 0 : index
    %c0_11 = arith.constant 0 : index
    %20 = vector.load %arg6[%c0_10, %c0_11] : memref<8x128xf32, #tpu.memory_space<vmem>>, vector<8x128xf32>
    tpu.vector_store %arg6[%c0_10, %c0_11], %19 {strides = array<i32>} : memref<8x128xf32, #tpu.memory_space<vmem>>, vector<8x128xf32>,
    return
  }
  func.func @transform_0(%arg0: i32) -> (i32, i32) {
    %c0_i32 = arith.constant 0 : i32
    %c0_i32_0 = arith.constant 0 : i32
    return %arg0, %c0_i32 : i32, i32
  }
  func.func @transform_1(%arg0: i32) -> (i32, i32) {
    %c0_i32 = arith.constant 0 : i32
    %c0_i32_0 = arith.constant 0 : i32
    %c0_i32_1 = arith.constant 0 : i32
    return %c0_i32, %c0_i32_0 : i32, i32
  }
  func.func @transform_2(%arg0: i32) -> (i32, i32) {
    %c0_i32 = arith.constant 0 : i32
    %c0_i32_0 = arith.constant 0 : i32
    %c0_i32_1 = arith.constant 0 : i32
    return %c0_i32, %c0_i32_0 : i32, i32
  }
  func.func @transform_3(%arg0: i32) -> (i32, i32) {
    %c0_i32 = arith.constant 0 : i32
    %c0_i32_0 = arith.constant 0 : i32
    %c0_i32_1 = arith.constant 0 : i32
    return %c0_i32, %c0_i32_0 : i32, i32
  }
  func.func @transform_4(%arg0: i32) -> (i32, i32) {
    %c0_i32 = arith.constant 0 : i32
    %c0_i32_0 = arith.constant 0 : i32
    %c0_i32_1 = arith.constant 0 : i32
    return %c0_i32, %c0_i32_0 : i32, i32
  }
  func.func @transform_5(%arg0: i32) -> (i32, i32) {
    %c0_i32 = arith.constant 0 : i32
    %c0_i32_0 = arith.constant 0 : i32
    return %arg0, %c0_i32 : i32, i32
  }
}

module attributes {stable_mosaic.version = 11 : i64} {
  func.func @kernel(%arg0: i32, %arg1: memref<8x128xf32, #tpu.memory_space<vmem>>, %arg2: memref<128x128xf32, #tpu.memory_space<vmem>>, %arg3: memref<1x128xf32, #tpu.memory_space<vmem>>, %arg4: memref<128x128xf32, #tpu.memory_space<vmem>>, %arg5: memref<1x128xf32, #tpu.memory_space<vmem>>, %arg6: memref<8x128xf32, #tpu.memory_space<vmem>>) attributes {dimension_semantics = [#tpu.dimension_semantics<parallel>], iteration_bounds = array<i64: 2>, scalar_prefetch = 0 : i64, scratch_operands = 0 : i64, tpu.core_type = #tpu.core_type<tc>, window_params = [{transform_indices = @transform_0, window_bounds = array<i64: 8, 128>}, {pipeline_mode = #tpu.pipeline_mode<synchronous>, transform_indices = @transform_1, window_bounds = array<i64: 128, 128>}, {pipeline_mode = #tpu.pipeline_mode<synchronous>, transform_indices = @transform_2, window_bounds = array<i64: 1, 128>}, {pipeline_mode = #tpu.pipeline_mode<synchronous>, transform_indices = @transform_3, window_bounds = array<i64: 128, 128>}, {pipeline_mode = #tpu.pipeline_mode<synchronous>, transform_indices = @transform_4, window_bounds = array<i64: 1, 128>}, {transform_indices = @transform_5, window_bounds = array<i64: 8, 128>}]} {
    %c0 = arith.constant 0 : index
    %c0_0 = arith.constant 0 : index
    %0 = vector.load %arg1[%c0, %c0_0] : memref<8x128xf32, #tpu.memory_space<vmem>>, vector<8x128xf32>
    %1 = tpu.iota {dimensions = array<i32: 1>} : vector<8x128xi32>
    %c32_i32 = arith.constant 32 : i32
    %2 = vector.broadcast %c32_i32 : i32 to vector<8x128xi32>
    %3 = arith.cmpi slt, %1, %2 : vector<8x128xi32>
    %c0_i32 = arith.constant 0 : i32
    %4 = arith.sitofp %c0_i32 : i32 to f32
    %5 = vector.broadcast %4 : f32 to vector<8x128xf32>
    %6 = arith.select %3, %0, %5 : vector<8x128xi1>, vector<8x128xf32>
    %c0_1 = arith.constant 0 : index
    %c0_2 = arith.constant 0 : index
    %7 = vector.load %arg2[%c0_1, %c0_2] : memref<128x128xf32, #tpu.memory_space<vmem>>, vector<128x128xf32>
    %cst = arith.constant dense<0.000000e+00> : vector<8x128xf32>
    %8 = tpu.matmul %6, %7, %cst {dimension_numbers = #tpu.dot_dimension_numbers<[1], [0], [0], [1], [0, 0, 1, 1], [], []>} : vector<8x128xf32>, vector<128x128xf32>, vector<8x128xf32> -> vector<8x128xf32>
    %c0_3 = arith.constant 0 : index
    %c0_4 = arith.constant 0 : index
    %9 = vector.load %arg3[%c0_3, %c0_4] : memref<1x128xf32, #tpu.memory_space<vmem>>, vector<1x128xf32>
    %10 = vector.broadcast %9 : vector<1x128xf32> to vector<8x128xf32>
    %11 = arith.addf %8, %10 : vector<8x128xf32>
    %12 = math.tanh %11 : vector<8x128xf32>
    %c0_5 = arith.constant 0 : index
    %c0_6 = arith.constant 0 : index
    %13 = vector.load %arg4[%c0_5, %c0_6] : memref<128x128xf32, #tpu.memory_space<vmem>>, vector<128x128xf32>
    %cst_7 = arith.constant dense<0.000000e+00> : vector<8x128xf32>
    %14 = tpu.matmul %12, %13, %cst_7 {dimension_numbers = #tpu.dot_dimension_numbers<[1], [0], [0], [1], [0, 0, 1, 1], [], []>} : vector<8x128xf32>, vector<128x128xf32>, vector<8x128xf32> -> vector<8x128xf32>
    %c0_8 = arith.constant 0 : index
    %c0_9 = arith.constant 0 : index
    %15 = vector.load %arg5[%c0_8, %c0_9] : memref<1x128xf32, #tpu.memory_space<vmem>>, vector<1x128xf32>
    %16 = vector.broadcast %15 : vector<1x128xf32> to vector<8x128xf32>
    %17 = arith.addf %14, %16 : vector<8x128xf32>
    %18 = math.tanh %17 : vector<8x128xf32>
    %19 = arith.addf %18, %6 : vector<8x128xf32>
    %c0_10 = arith.constant 0 : index
    %c0_11 = arith.constant 0 : index
    %20 = vector.load %arg6[%c0_10, %c0_11] : memref<8x128xf32, #tpu.memory_space<vmem>>, vector<8x128xf32>
    tpu.vector_store %arg6[%c0_10, %c0_11], %19 {strides = array<i32>} : memref<8x128xf32, #tpu.memory_space<vmem>>, vector<8x128xf32>,
    return
  }
  func.func @transform_0(%arg0: i32) -> (i32, i32) {
    %c0_i32 = arith.constant 0 : i32
    %c0_i32_0 = arith.constant 0 : i32
    return %arg0, %c0_i32 : i32, i32
  }
  func.func @transform_1(%arg0: i32) -> (i32, i32) {
    %c0_i32 = arith.constant 0 : i32
    %c0_i32_0 = arith.constant 0 : i32
    %c0_i32_1 = arith.constant 0 : i32
    return %c0_i32, %c0_i32_0 : i32, i32
  }
  func.func @transform_2(%arg0: i32) -> (i32, i32) {
    %c0_i32 = arith.constant 0 : i32
    %c0_i32_0 = arith.constant 0 : i32
    %c0_i32_1 = arith.constant 0 : i32
    return %c0_i32, %c0_i32_0 : i32, i32
  }
  func.func @transform_3(%arg0: i32) -> (i32, i32) {
    %c0_i32 = arith.constant 0 : i32
    %c0_i32_0 = arith.constant 0 : i32
    %c0_i32_1 = arith.constant 0 : i32
    return %c0_i32, %c0_i32_0 : i32, i32
  }
  func.func @transform_4(%arg0: i32) -> (i32, i32) {
    %c0_i32 = arith.constant 0 : i32
    %c0_i32_0 = arith.constant 0 : i32
    %c0_i32_1 = arith.constant 0 : i32
    return %c0_i32, %c0_i32_0 : i32, i32
  }
  func.func @transform_5(%arg0: i32) -> (i32, i32) {
    %c0_i32 = arith.constant 0 : i32
    %c0_i32_0 = arith.constant 0 : i32
    return %arg0, %c0_i32 : i32, i32
  }
}

</mosaic_0001>

<bundles_post_ra>
// kernel: tpu_custom_call.1
= control target key start
LH: loop header
LB: loop body
LE: loop exit
PB: predicated region body
PF: predicated region fallthrough
CT: control target
= control target key end

     0   :  { %10 = vsyncpa [#allocation3], 0  ;;  %s917_s0 = inlined_call_operand.hbm [shape: f32[16,32], index: 0, kind: input, shape index: {}]   ;;  %s918_s1 = inlined_call_operand.hbm [shape: f32[128,128], index: 1, kind: input, shape index: {}]   ;;  %s919_s2 = inlined_call_operand.vmem [shape: f32[1,128], index: 2, kind: input, shape index: {}]   ;;  %s920_s3 = inlined_call_operand.hbm [shape: f32[128,128], index: 3, kind: input, shape index: {}]   ;;  %s921_s4 = inlined_call_operand.vmem [shape: f32[1,128], index: 4, kind: input, shape index: {}]   ;;  %s922_s5 = inlined_call_operand.hbm [shape: f32[16,32], index: 5, kind: output, shape index: {}]  }
   0x1   :  { %12 = vsyncpa [#allocation3 + $0x1], 0 }
   0x2   :  { %13 = vsyncpa [#allocation6], 0 }
   0x3   :  { %14 = vsyncpa [#allocation4], 0 }
   0x4   :  { %16 = vsyncpa [#allocation4 + $0x1], 0  ;;  %s757_s18 = smov 0   ;;  %s759_s19 = smov 0  }
   0x5   :  { %s761_s20 = smov 0   ;;  %s763_s21 = smov 0  }
   0x6 LB: > { %s174_s24 = sshll.u32 %s918_s1, 4  ;;  %s781_s25 = sadd.s32 4294967295, %s721_s21   ;;  %s721_s21 = sphi %s763_s21, %s933_s21   ;;  %s717_s20 = sphi %s761_s20, %s932_s20   ;;  %s713_s19 = sphi %s759_s19, %s931_s19   ;;  %s709_s18 = sphi %s757_s18, %s930_s18   ;;  %s175_s24 = int_to_ptr.hbm [resolvable:$true] %s174_s24 }
   0x7   : > { %p470_p0 = scmp.ge.s32.totalorder %s721_s21, 1  ;;  %p43_p1 = scmp.eq.s32.totalorder %s781_s25, 0 }
   0x8   : > { %p163_p2 = scmp.lt.s32.totalorder %s721_s21, 3  ;;  %s723_s27 = smov [#allocation5]  }
   0x9   : > { %s176_s28 = sshll.u32 %s723_s27, 4  ;;  %s191_s6 = sshll.u32 %s920_s3, 4  ;;  %s177_s28 = int_to_ptr.vmem [resolvable:$true] %s176_s28  ;;  %s192_s6 = int_to_ptr.hbm [resolvable:$true] %s191_s6 }
   0xa   : > { %p786_p3 = pnand %p470_p0, %p163_p2  ;;  %s724_s7 = smov [#allocation7]  }
   0xb   : > { %s193_s8 = sshll.u32 %s724_s7, 4  ;;  %s725_s9 = smov 128   ;;  %s194_s8 = int_to_ptr.vmem [resolvable:$true] %s193_s8 }
   0xc   : > { %p498_p4 = pneg %p786_p3  ;;  %s726_s10 = smov 8  }
   0xd   : > { %s469_s11 = sadd.s32 4294967294, %s721_s21   ;;  %s800_s12 = sadd.s32 1, %s721_s21  }
   0xe   : > { %p499_p6 = pnand %p498_p4, %p43_p1  ;;  %s26_s13 = ssub.s32 %s721_s21, %s800_s12 }
   0xf   : > { %s29_s14 = sadd.s32 1, %s717_s20  ;;  %p27_p7 = scmp.eq.s32.totalorder %s26_s13, 0 }
  0x10   : > { %501 = dma.hbm_to_vmem [thread:$0]  (!%p499_p6), %s175_s24, 2048, %s177_s28, [#allocation6], %s725_s9, %s725_s9, %s726_s10  }
  0x11   : > { %504 = dma.hbm_to_vmem [thread:$0]  (!%p499_p6), %s192_s6, 2048, %s194_s8, [#allocation6], %s725_s9, %s725_s9, %s726_s10  }
  0x12   : > { %p36_p8 = scmp.ne.s32.totalorder %s717_s20, %s713_s19  ;;  %p37_p9 = scmp.eq.s32.totalorder %s721_s21, 0 }
  0x13   : > { %p42_p10 = scmp.ne.s32.totalorder %s713_s19, %s709_s18  ;;  %p150_p13 = scmp.eq.s32.totalorder %s781_s25, 1 }
  0x14   : > { %s811_s15 = scalar_select %p27_p7, %s717_s20, %s29_s14  }
  0x15   : > { %p813_p11 = por %p37_p9, %p36_p8  ;;  %p819_p12 = por %p43_p1, %p42_p10 }
  0x16   : > { %p156_p0 = scmp.eq.s32.totalorder %s469_s11, 1  ;;  %p515_p2 = scmp.lt.s32.totalorder %s721_s21, 2 }
  0x17   : > { %s210_s22 = sand.u32 1, %s717_s20   ;;  %p826_p4 = por %p150_p13, %p36_p8 }
  0x18   : > { %p830_p6 = por %p156_p0, %p42_p10  ;;  %s474_s27 = sshll.u32 %s210_s22, 3 }
  0x19   : > { %s475_s28 = sshll.u32 %s721_s21, 3  ;;  %s214_s7 = scalar_lea.vmem [#allocation2], %s474_s27 }
  0x1a   : > { %s218_s6 = scalar_lea.hbm %s917_s0, %s475_s28  ;;  %s222_s8 = sshll.u32 %s214_s7, 4  ;;  %s223_s8 = int_to_ptr.vmem [resolvable:$true] %s222_s8 }
  0x1b   : > { %s220_s9 = sshll.u32 %s218_s6, 4  ;;  %p840_p7 = pnand %p515_p2, %p813_p11  ;;  %s221_s9 = int_to_ptr.hbm [resolvable:$true] %s220_s9 }
  0x1c   : > { %s211_s11 = scalar_lea.sflag [#allocation3], %s210_s22  ;;  %s621_s13 = sshra.s32 %s221_s9, 4  ;;  %s622_s13 = int_to_ptr.hbm [resolvable:$true] %s621_s13 }
  0x1d   : > { %s623_s14 = scalar_lea.hbm %s622_s13, 8  ;;  %p625_p9 = pneg %p840_p7 }
  0x1e   : > { %p624_p8 = scmp.ne.s32.totalorder %s622_s13, %s623_s14  ;;  %s628_s29 = scalar_lea.hbm %s917_s0, 16 }
  0x1f   : > { %p629_p11 = scmp.lt.s32.totalorder %s622_s13, %s917_s0  ;;  %p630_p0 = scmp.lt.s32.totalorder %s628_s29, %s623_s14 }
  0x20   : > { %p626_p10 = pnand %p625_p9, %p624_p8 }
  0x21   : > { %p631_p2 = por %p630_p0, %p629_p11 }
  0x22   : > { %p627_p13 = pneg %p626_p10 }
  0x24   : > { %p632_p5 = pnand %p631_p2, %p627_p13 }
  0x26   : > { %635 = shalt.err (!%p632_p5)
}
  0x27   : > { %508 = dma.hbm_to_vmem [thread:$0]  (!%p840_p7), %s221_s9, 128, %s223_s8, %s211_s11  }
  0x28   : > { %231 = sbr.rel (%p786_p3) target bundleno = 355 (0x163), region = 40  ;;  %s857_s22 = sand.u32 (!%p786_p3), 1, %s713_s19  }
  0x29   : > { %s477_s6 = sshll.u32 (!%p786_p3), %s857_s22, 3  ;;  %s234_s7 = scalar_lea.sflag (!%p786_p3), [#allocation3], %s857_s22 }
  0x2a   : > { %s237_s13 = scalar_lea.vmem (!%p786_p3), [#allocation2], %s477_s6 }
  0x2d   : > { %696 = dma.done.wait (%p819_p12), %s234_s7, 128  }
  0x2e   : > { %698 = vsyncadd (%p819_p12), %s234_s7, 4294967168 }
  0x2f   : > { %700 = dma.done.wait (%p43_p1), [#allocation6], 4096  }
  0x30   : > { %702 = vsyncadd (%p43_p1), [#allocation6], 4294963200  ;;  %v276_v0 = vlaneseq  ;;  %v295_v1 = vld [vmem:[#allocation5 + $0x78] sm:$0xff]  ;;  %v294_v2 = vld [vmem:[#allocation5 + $0x70] sm:$0xff]  ;;  %s483_s10 = sshll.u32 %s781_s25, 3  ;;  %s274_s28 = scalar_lea.vmem [#allocation8], %s477_s6 }
  0x31   : > { %300 = vmatpush.msra.mxu0 %v295_v1  ;;  %v293_v4 = vld [vmem:[#allocation5 + $0x68] sm:$0xff]  ;;  %v292_v5 = vld [vmem:[#allocation5 + $0x60] sm:$0xff]  ;;  %v275_v6 = vld [vmem:[%s237_s13] sm:$0xff]  ;;  %s375_s27 = scalar_lea.hbm %s922_s5, %s483_s10  ;;  %s377_s29 = sshll.u32 %s274_s28, 4  ;;  %s378_s29 = int_to_ptr.vmem [resolvable:$true] %s377_s29 }
  0x32   : > { %v277_v3 = vand.u32 127, %v276_v0  ;;  %v336_v7 = vld [vmem:[#allocation7 + $0x78] sm:$0xff]  ;;  %v335_v10 = vld [vmem:[#allocation7 + $0x70] sm:$0xff]  ;;  %v334_v11 = vld [vmem:[#allocation7 + $0x68] sm:$0xff]  ;;  %s379_s30 = sshll.u32 %s375_s27, 4  ;;  %s365_s16 = scalar_lea.sflag [#allocation4], %s857_s22  ;;  %s380_s30 = int_to_ptr.hbm [resolvable:$true] %s379_s30 }
  0x33   : > { %301 = vmatpush.msra.mxu0 %v294_v2  ;;  %v291_v8 = vld [vmem:[#allocation5 + $0x58] sm:$0xff]  ;;  %341 = vmatpush.msra.mxu1 %v336_v7  ;;  %v290_v12 = vld [vmem:[#allocation5 + $0x50] sm:$0xff]  ;;  %v333_v13 = vld [vmem:[#allocation7 + $0x60] sm:$0xff]  ;;  %s665_s7 = sshra.s32 %s380_s30, 4  ;;  %s671_s6 = scalar_lea.hbm %s922_s5, 16  ;;  %s666_s7 = int_to_ptr.hbm [resolvable:$true] %s665_s7 }
  0x34   : > { %vm278_vm0 = vcmp.lt.s32.totalorder %v277_v3, 32  ;;  %v289_v14 = vld [vmem:[#allocation5 + $0x48] sm:$0xff]  ;;  %v332_v15 = vld [vmem:[#allocation7 + $0x58] sm:$0xff]  ;;  %v288_v16 = vld [vmem:[#allocation5 + $0x40] sm:$0xff]  ;;  %s667_s25 = scalar_lea.hbm %s666_s7, 8  ;;  %p672_p12 = scmp.lt.s32.totalorder %s666_s7, %s922_s5 }
  0x35   : > { %302 = vmatpush.msra.mxu0 %v293_v4  ;;  %v872_v9 = vsel %vm278_vm0, %v275_v6, 0.0  ;;  %342 = vmatpush.msra.mxu1 %v335_v10  ;;  %v331_v17 = vld [vmem:[#allocation7 + $0x50] sm:$0xff]  ;;  %v287_v18 = vld [vmem:[#allocation5 + $0x38] sm:$0xff]  ;;  %v330_v19 = vld [vmem:[#allocation7 + $0x48] sm:$0xff]  ;;  %p668_p1 = scmp.ne.s32.totalorder %s666_s7, %s667_s25  ;;  %p673_p7 = scmp.lt.s32.totalorder %s671_s6, %s667_s25 }
  0x36   : > { %v286_v20 = vld [vmem:[#allocation5 + $0x30] sm:$0xff]  ;;  %v329_v21 = vld [vmem:[#allocation7 + $0x40] sm:$0xff]  ;;  %v285_v22 = vld [vmem:[#allocation5 + $0x28] sm:$0xff] }
  0x37   : > { %303 = vmatpush.msra.mxu0 %v292_v5  ;;  %343 = vmatpush.msra.mxu1 %v334_v11  ;;  %v328_v23 = vld [vmem:[#allocation7 + $0x38] sm:$0xff]  ;;  %v284_v24 = vld [vmem:[#allocation5 + $0x20] sm:$0xff]  ;;  %v327_v25 = vld [vmem:[#allocation7 + $0x30] sm:$0xff]  ;;  %p669_p3 = pnand %p668_p1, %p826_p4  ;;  %p674_p8 = por %p673_p7, %p672_p12 }
  0x38   : > { %v283_v26 = vld [vmem:[#allocation5 + $0x18] sm:$0xff]  ;;  %v326_v27 = vld [vmem:[#allocation7 + $0x28] sm:$0xff]  ;;  %v282_v28 = vld [vmem:[#allocation5 + $0x10] sm:$0xff] }
  0x39   : > { %304 = vmatpush.msra.mxu0 %v291_v8  ;;  %344 = vmatpush.msra.mxu1 %v333_v13  ;;  %v281_v29 = vld [vmem:[#allocation5 + $0x8] sm:$0xff]  ;;  %v280_v30 = vld [vmem:[#allocation5] sm:$0xff]  ;;  %v324_v32 = vld [vmem:[#allocation7 + $0x18] sm:$0xff]  ;;  %p670_p5 = pneg %p669_p3 }
  0x3a   : > { %v325_v31 = vld [vmem:[#allocation7 + $0x20] sm:$0xff]  ;;  %v323_v33 = vld [vmem:[#allocation7 + $0x10] sm:$0xff]  ;;  %v322_v34 = vld [vmem:[#allocation7 + $0x8] sm:$0xff] }
  0x3b   : > { %305 = vmatpush.msra.mxu0 %v290_v12  ;;  %345 = vmatpush.msra.mxu1 %v332_v15  ;;  %v321_v35 = vld [vmem:[#allocation7] sm:$0xff]  ;;  %v555_v36 = vld [vmem:[%s919_s2] ss:$0 sm:$0xff]  ;;  %p675_p9 = pnand %p674_p8, %p670_p5 }
  0x3c   : > { %v556_v40 = vld [vmem:[%s921_s4] ss:$0 sm:$0xff] }
  0x3d   : > { %306 = vmatpush.msra.mxu0 %v289_v14  ;;  %346 = vmatpush.msra.mxu1 %v331_v17 }
  0x3f   : > { %307 = vmatpush.msra.mxu0 %v288_v16  ;;  %347 = vmatpush.msra.mxu1 %v330_v19 }
  0x41   : > { %308 = vmatpush.msra.mxu0 %v287_v18  ;;  %348 = vmatpush.msra.mxu1 %v329_v21 }
  0x43   : > { %309 = vmatpush.msra.mxu0 %v286_v20  ;;  %349 = vmatpush.msra.mxu1 %v328_v23 }
  0x45   : > { %310 = vmatpush.msra.mxu0 %v285_v22  ;;  %350 = vmatpush.msra.mxu1 %v327_v25 }
  0x47   : > { %311 = vmatpush.msra.mxu0 %v284_v24  ;;  %351 = vmatpush.msra.mxu1 %v326_v27 }
  0x49   : > { %312 = vmatpush.msra.mxu0 %v283_v26  ;;  %352 = vmatpush.msra.mxu1 %v325_v31 }
  0x4b   : > { %313 = vmatpush.msra.mxu0 %v282_v28  ;;  %353 = vmatpush.msra.mxu1 %v324_v32 }
  0x4d   : > { %314 = vmatpush.msra.mxu0 %v281_v29  ;;  %354 = vmatpush.msra.mxu1 %v323_v33 }
  0x4f   : > { %315 = vmatpush.msra.mxu0 %v280_v30  ;;  %355 = vmatpush.msra.mxu1 %v322_v34 }
  0x50   : > { %481 = vmatmul.msk.f32.vlgmr.msra.gmra.mxu0 %vm278_vm0, %v275_v6 }
  0x51   : > { %356 = vmatpush.msra.mxu1 %v321_v35 }
  0xcd   : > { %v317_v37 = vpop.f32.mrf.mxu0 }
  0xce   : > { %v318_v38 = vadd.f32 %v555_v36, %v317_v37 }
  0xd0   : > { %557 = vtanh.f32 %v318_v38 }
  0xd6   : > { %v558_v39 = vpop.eup %557 }
  0xd7   : > { %357 = vmatmul.f32.vlgmr.msra.gmra.mxu1 %v558_v39 }
 0x154   : > { %v358_v41 = vpop.f32.mrf.mxu1 }
 0x155   : > { %v359_v42 = vadd.f32 %v556_v40, %v358_v41 }
 0x157   : > { %559 = vtanh.f32 %v359_v42 }
 0x15d   : > { %v560_v43 = vpop.eup %559 }
 0x15e   : > { %v362_v44 = vadd.f32 %v560_v43, %v872_v9 }
 0x160   : > { %363 = vst [vmem:[%s274_s28] sm:$0xff] %v362_v44 }
 0x161   : > { %678 = shalt.err (!%p675_p9)
}
 0x162   : > { %496 = dma.vmem_to_hbm [thread:$0]  (%p826_p4), %s378_s29, 128, %s380_s30, %s365_s16  }
 0x163 PF: > { %s391_s22 = sand.u32 1, %s709_s18   ;;  %p929_p10 = scmp.ge.s32.totalorder %s721_s21, 2 }
 0x164   : > { %s392_s9 = scalar_lea.sflag [#allocation4], %s391_s22 }
 0x165   : > { %p510_p13 = pnand %p929_p10, %p830_p6 }
 0x167   : > { %p511_p11 = pneg %p510_p13 }
 0x169   : > { %704 = dma.done.wait (%p511_p11), %s392_s9, 128  }
 0x16a   : > { %706 = vsyncadd (%p511_p11), %s392_s9, 4294967168  ;;  %p19_p0 = scmp.ge.s32.totalorder %s800_s12, 4   ;;  %s930_s18 = smov %s713_s19 }
 0x16b   : > { %s931_s19 = smov %s717_s20  ;;  %s932_s20 = smov %s811_s15 }
 0x16c   : > { %s933_s21 = smov %s800_s12  ;;  %21 = sbr.rel (!%p19_p0) target bundleno = 6 (0x6), region = 93 }
 0x171   :  { %398 = vsyncpa [#allocation3], 1 }
 0x172   :  { %400 = vsyncpa [#allocation3 + $0x1], 1 }
 0x173   :  { %401 = vsyncpa [#allocation6], 1 }
 0x174   :  { %402 = vsyncpa [#allocation4], 1 }
 0x175   :  { %404 = vsyncpa [#allocation4 + $0x1], 1 }

// kernel: tpu_custom_call.1
= control target key start
LH: loop header
LB: loop body
LE: loop exit
PB: predicated region body
PF: predicated region fallthrough
CT: control target
= control target key end

     0   :  { %10 = vsyncpa [#allocation3], 0  ;;  %s917_s0 = inlined_call_operand.hbm [shape: f32[16,32], index: 0, kind: input, shape index: {}]   ;;  %s918_s1 = inlined_call_operand.hbm [shape: f32[128,128], index: 1, kind: input, shape index: {}]   ;;  %s919_s2 = inlined_call_operand.vmem [shape: f32[1,128], index: 2, kind: input, shape index: {}]   ;;  %s920_s3 = inlined_call_operand.hbm [shape: f32[128,128], index: 3, kind: input, shape index: {}]   ;;  %s921_s4 = inlined_call_operand.vmem [shape: f32[1,128], index: 4, kind: input, shape index: {}]   ;;  %s922_s5 = inlined_call_operand.hbm [shape: f32[16,32], index: 5, kind: output, shape index: {}]  }
   0x1   :  { %12 = vsyncpa [#allocation3 + $0x1], 0 }
   0x2   :  { %13 = vsyncpa [#allocation6], 0 }
   0x3   :  { %14 = vsyncpa [#allocation4], 0 }
   0x4   :  { %16 = vsyncpa [#allocation4 + $0x1], 0  ;;  %s757_s18 = smov 0   ;;  %s759_s19 = smov 0  }
   0x5   :  { %s761_s20 = smov 0   ;;  %s763_s21 = smov 0  }
   0x6 LB: > { %s174_s24 = sshll.u32 %s918_s1, 4  ;;  %s781_s25 = sadd.s32 4294967295, %s721_s21   ;;  %s721_s21 = sphi %s763_s21, %s933_s21   ;;  %s717_s20 = sphi %s761_s20, %s932_s20   ;;  %s713_s19 = sphi %s759_s19, %s931_s19   ;;  %s709_s18 = sphi %s757_s18, %s930_s18   ;;  %s175_s24 = int_to_ptr.hbm [resolvable:$true] %s174_s24 }
   0x7   : > { %p470_p0 = scmp.ge.s32.totalorder %s721_s21, 1  ;;  %p43_p1 = scmp.eq.s32.totalorder %s781_s25, 0 }
   0x8   : > { %p163_p2 = scmp.lt.s32.totalorder %s721_s21, 3  ;;  %s723_s27 = smov [#allocation5]  }
   0x9   : > { %s176_s28 = sshll.u32 %s723_s27, 4  ;;  %s191_s6 = sshll.u32 %s920_s3, 4  ;;  %s177_s28 = int_to_ptr.vmem [resolvable:$true] %s176_s28  ;;  %s192_s6 = int_to_ptr.hbm [resolvable:$true] %s191_s6 }
   0xa   : > { %p786_p3 = pnand %p470_p0, %p163_p2  ;;  %s724_s7 = smov [#allocation7]  }
   0xb   : > { %s193_s8 = sshll.u32 %s724_s7, 4  ;;  %s725_s9 = smov 128   ;;  %s194_s8 = int_to_ptr.vmem [resolvable:$true] %s193_s8 }
   0xc   : > { %p498_p4 = pneg %p786_p3  ;;  %s726_s10 = smov 8  }
   0xd   : > { %s469_s11 = sadd.s32 4294967294, %s721_s21   ;;  %s800_s12 = sadd.s32 1, %s721_s21  }
   0xe   : > { %p499_p6 = pnand %p498_p4, %p43_p1  ;;  %s26_s13 = ssub.s32 %s721_s21, %s800_s12 }
   0xf   : > { %s29_s14 = sadd.s32 1, %s717_s20  ;;  %p27_p7 = scmp.eq.s32.totalorder %s26_s13, 0 }
  0x10   : > { %501 = dma.hbm_to_vmem [thread:$0]  (!%p499_p6), %s175_s24, 2048, %s177_s28, [#allocation6], %s725_s9, %s725_s9, %s726_s10  }
  0x11   : > { %504 = dma.hbm_to_vmem [thread:$0]  (!%p499_p6), %s192_s6, 2048, %s194_s8, [#allocation6], %s725_s9, %s725_s9, %s726_s10  }
  0x12   : > { %p36_p8 = scmp.ne.s32.totalorder %s717_s20, %s713_s19  ;;  %p37_p9 = scmp.eq.s32.totalorder %s721_s21, 0 }
  0x13   : > { %p42_p10 = scmp.ne.s32.totalorder %s713_s19, %s709_s18  ;;  %p150_p13 = scmp.eq.s32.totalorder %s781_s25, 1 }
  0x14   : > { %s811_s15 = scalar_select %p27_p7, %s717_s20, %s29_s14  }
  0x15   : > { %p813_p11 = por %p37_p9, %p36_p8  ;;  %p819_p12 = por %p43_p1, %p42_p10 }
  0x16   : > { %p156_p0 = scmp.eq.s32.totalorder %s469_s11, 1  ;;  %p515_p2 = scmp.lt.s32.totalorder %s721_s21, 2 }
  0x17   : > { %s210_s22 = sand.u32 1, %s717_s20   ;;  %p826_p4 = por %p150_p13, %p36_p8 }
  0x18   : > { %p830_p6 = por %p156_p0, %p42_p10  ;;  %s474_s27 = sshll.u32 %s210_s22, 3 }
  0x19   : > { %s475_s28 = sshll.u32 %s721_s21, 3  ;;  %s214_s7 = scalar_lea.vmem [#allocation2], %s474_s27 }
  0x1a   : > { %s218_s6 = scalar_lea.hbm %s917_s0, %s475_s28  ;;  %s222_s8 = sshll.u32 %s214_s7, 4  ;;  %s223_s8 = int_to_ptr.vmem [resolvable:$true] %s222_s8 }
  0x1b   : > { %s220_s9 = sshll.u32 %s218_s6, 4  ;;  %p840_p7 = pnand %p515_p2, %p813_p11  ;;  %s221_s9 = int_to_ptr.hbm [resolvable:$true] %s220_s9 }
  0x1c   : > { %s211_s11 = scalar_lea.sflag [#allocation3], %s210_s22  ;;  %s621_s13 = sshra.s32 %s221_s9, 4  ;;  %s622_s13 = int_to_ptr.hbm [resolvable:$true] %s621_s13 }
  0x1d   : > { %s623_s14 = scalar_lea.hbm %s622_s13, 8  ;;  %p625_p9 = pneg %p840_p7 }
  0x1e   : > { %p624_p8 = scmp.ne.s32.totalorder %s622_s13, %s623_s14  ;;  %s628_s29 = scalar_lea.hbm %s917_s0, 16 }
  0x1f   : > { %p629_p11 = scmp.lt.s32.totalorder %s622_s13, %s917_s0  ;;  %p630_p0 = scmp.lt.s32.totalorder %s628_s29, %s623_s14 }
  0x20   : > { %p626_p10 = pnand %p625_p9, %p624_p8 }
  0x21   : > { %p631_p2 = por %p630_p0, %p629_p11 }
  0x22   : > { %p627_p13 = pneg %p626_p10 }
  0x24   : > { %p632_p5 = pnand %p631_p2, %p627_p13 }
  0x26   : > { %635 = shalt.err (!%p632_p5)
}
  0x27   : > { %508 = dma.hbm_to_vmem [thread:$0]  (!%p840_p7), %s221_s9, 128, %s223_s8, %s211_s11  }
  0x28   : > { %231 = sbr.rel (%p786_p3) target bundleno = 355 (0x163), region = 40  ;;  %s857_s22 = sand.u32 (!%p786_p3), 1, %s713_s19  }
  0x29   : > { %s477_s6 = sshll.u32 (!%p786_p3), %s857_s22, 3  ;;  %s234_s7 = scalar_lea.sflag (!%p786_p3), [#allocation3], %s857_s22 }
  0x2a   : > { %s237_s13 = scalar_lea.vmem (!%p786_p3), [#allocation2], %s477_s6 }
  0x2d   : > { %696 = dma.done.wait (%p819_p12), %s234_s7, 128  }
  0x2e   : > { %698 = vsyncadd (%p819_p12), %s234_s7, 4294967168 }
  0x2f   : > { %700 = dma.done.wait (%p43_p1), [#allocation6], 4096  }
  0x30   : > { %702 = vsyncadd (%p43_p1), [#allocation6], 4294963200  ;;  %v276_v0 = vlaneseq  ;;  %v295_v1 = vld [vmem:[#allocation5 + $0x78] sm:$0xff]  ;;  %v294_v2 = vld [vmem:[#allocation5 + $0x70] sm:$0xff]  ;;  %s483_s10 = sshll.u32 %s781_s25, 3  ;;  %s274_s28 = scalar_lea.vmem [#allocation8], %s477_s6 }
  0x31   : > { %300 = vmatpush.msra.mxu0 %v295_v1  ;;  %v293_v4 = vld [vmem:[#allocation5 + $0x68] sm:$0xff]  ;;  %v292_v5 = vld [vmem:[#allocation5 + $0x60] sm:$0xff]  ;;  %v275_v6 = vld [vmem:[%s237_s13] sm:$0xff]  ;;  %s375_s27 = scalar_lea.hbm %s922_s5, %s483_s10  ;;  %s377_s29 = sshll.u32 %s274_s28, 4  ;;  %s378_s29 = int_to_ptr.vmem [resolvable:$true] %s377_s29 }
  0x32   : > { %v277_v3 = vand.u32 127, %v276_v0  ;;  %v336_v7 = vld [vmem:[#allocation7 + $0x78] sm:$0xff]  ;;  %v335_v10 = vld [vmem:[#allocation7 + $0x70] sm:$0xff]  ;;  %v334_v11 = vld [vmem:[#allocation7 + $0x68] sm:$0xff]  ;;  %s379_s30 = sshll.u32 %s375_s27, 4  ;;  %s365_s16 = scalar_lea.sflag [#allocation4], %s857_s22  ;;  %s380_s30 = int_to_ptr.hbm [resolvable:$true] %s379_s30 }
  0x33   : > { %301 = vmatpush.msra.mxu0 %v294_v2  ;;  %v291_v8 = vld [vmem:[#allocation5 + $0x58] sm:$0xff]  ;;  %341 = vmatpush.msra.mxu1 %v336_v7  ;;  %v290_v12 = vld [vmem:[#allocation5 + $0x50] sm:$0xff]  ;;  %v333_v13 = vld [vmem:[#allocation7 + $0x60] sm:$0xff]  ;;  %s665_s7 = sshra.s32 %s380_s30, 4  ;;  %s671_s6 = scalar_lea.hbm %s922_s5, 16  ;;  %s666_s7 = int_to_ptr.hbm [resolvable:$true] %s665_s7 }
  0x34   : > { %vm278_vm0 = vcmp.lt.s32.totalorder %v277_v3, 32  ;;  %v289_v14 = vld [vmem:[#allocation5 + $0x48] sm:$0xff]  ;;  %v332_v15 = vld [vmem:[#allocation7 + $0x58] sm:$0xff]  ;;  %v288_v16 = vld [vmem:[#allocation5 + $0x40] sm:$0xff]  ;;  %s667_s25 = scalar_lea.hbm %s666_s7, 8  ;;  %p672_p12 = scmp.lt.s32.totalorder %s666_s7, %s922_s5 }
  0x35   : > { %302 = vmatpush.msra.mxu0 %v293_v4  ;;  %v872_v9 = vsel %vm278_vm0, %v275_v6, 0.0  ;;  %342 = vmatpush.msra.mxu1 %v335_v10  ;;  %v331_v17 = vld [vmem:[#allocation7 + $0x50] sm:$0xff]  ;;  %v287_v18 = vld [vmem:[#allocation5 + $0x38] sm:$0xff]  ;;  %v330_v19 = vld [vmem:[#allocation7 + $0x48] sm:$0xff]  ;;  %p668_p1 = scmp.ne.s32.totalorder %s666_s7, %s667_s25  ;;  %p673_p7 = scmp.lt.s32.totalorder %s671_s6, %s667_s25 }
  0x36   : > { %v286_v20 = vld [vmem:[#allocation5 + $0x30] sm:$0xff]  ;;  %v329_v21 = vld [vmem:[#allocation7 + $0x40] sm:$0xff]  ;;  %v285_v22 = vld [vmem:[#allocation5 + $0x28] sm:$0xff] }
  0x37   : > { %303 = vmatpush.msra.mxu0 %v292_v5  ;;  %343 = vmatpush.msra.mxu1 %v334_v11  ;;  %v328_v23 = vld [vmem:[#allocation7 + $0x38] sm:$0xff]  ;;  %v284_v24 = vld [vmem:[#allocation5 + $0x20] sm:$0xff]  ;;  %v327_v25 = vld [vmem:[#allocation7 + $0x30] sm:$0xff]  ;;  %p669_p3 = pnand %p668_p1, %p826_p4  ;;  %p674_p8 = por %p673_p7, %p672_p12 }
  0x38   : > { %v283_v26 = vld [vmem:[#allocation5 + $0x18] sm:$0xff]  ;;  %v326_v27 = vld [vmem:[#allocation7 + $0x28] sm:$0xff]  ;;  %v282_v28 = vld [vmem:[#allocation5 + $0x10] sm:$0xff] }
  0x39   : > { %304 = vmatpush.msra.mxu0 %v291_v8  ;;  %344 = vmatpush.msra.mxu1 %v333_v13  ;;  %v281_v29 = vld [vmem:[#allocation5 + $0x8] sm:$0xff]  ;;  %v280_v30 = vld [vmem:[#allocation5] sm:$0xff]  ;;  %v324_v32 = vld [vmem:[#allocation7 + $0x18] sm:$0xff]  ;;  %p670_p5 = pneg %p669_p3 }
  0x3a   : > { %v325_v31 = vld [vmem:[#allocation7 + $0x20] sm:$0xff]  ;;  %v323_v33 = vld [vmem:[#allocation7 + $0x10] sm:$0xff]  ;;  %v322_v34 = vld [vmem:[#allocation7 + $0x8] sm:$0xff] }
  0x3b   : > { %305 = vmatpush.msra.mxu0 %v290_v12  ;;  %345 = vmatpush.msra.mxu1 %v332_v15  ;;  %v321_v35 = vld [vmem:[#allocation7] sm:$0xff]  ;;  %v555_v36 = vld [vmem:[%s919_s2] ss:$0 sm:$0xff]  ;;  %p675_p9 = pnand %p674_p8, %p670_p5 }
  0x3c   : > { %v556_v40 = vld [vmem:[%s921_s4] ss:$0 sm:$0xff] }
  0x3d   : > { %306 = vmatpush.msra.mxu0 %v289_v14  ;;  %346 = vmatpush.msra.mxu1 %v331_v17 }
  0x3f   : > { %307 = vmatpush.msra.mxu0 %v288_v16  ;;  %347 = vmatpush.msra.mxu1 %v330_v19 }
  0x41   : > { %308 = vmatpush.msra.mxu0 %v287_v18  ;;  %348 = vmatpush.msra.mxu1 %v329_v21 }
  0x43   : > { %309 = vmatpush.msra.mxu0 %v286_v20  ;;  %349 = vmatpush.msra.mxu1 %v328_v23 }
  0x45   : > { %310 = vmatpush.msra.mxu0 %v285_v22  ;;  %350 = vmatpush.msra.mxu1 %v327_v25 }
  0x47   : > { %311 = vmatpush.msra.mxu0 %v284_v24  ;;  %351 = vmatpush.msra.mxu1 %v326_v27 }
  0x49   : > { %312 = vmatpush.msra.mxu0 %v283_v26  ;;  %352 = vmatpush.msra.mxu1 %v325_v31 }
  0x4b   : > { %313 = vmatpush.msra.mxu0 %v282_v28  ;;  %353 = vmatpush.msra.mxu1 %v324_v32 }
  0x4d   : > { %314 = vmatpush.msra.mxu0 %v281_v29  ;;  %354 = vmatpush.msra.mxu1 %v323_v33 }
  0x4f   : > { %315 = vmatpush.msra.mxu0 %v280_v30  ;;  %355 = vmatpush.msra.mxu1 %v322_v34 }
  0x50   : > { %481 = vmatmul.msk.f32.vlgmr.msra.gmra.mxu0 %vm278_vm0, %v275_v6 }
  0x51   : > { %356 = vmatpush.msra.mxu1 %v321_v35 }
  0xcd   : > { %v317_v37 = vpop.f32.mrf.mxu0 }
  0xce   : > { %v318_v38 = vadd.f32 %v555_v36, %v317_v37 }
  0xd0   : > { %557 = vtanh.f32 %v318_v38 }
  0xd6   : > { %v558_v39 = vpop.eup %557 }
  0xd7   : > { %357 = vmatmul.f32.vlgmr.msra.gmra.mxu1 %v558_v39 }
 0x154   : > { %v358_v41 = vpop.f32.mrf.mxu1 }
 0x155   : > { %v359_v42 = vadd.f32 %v556_v40, %v358_v41 }
 0x157   : > { %559 = vtanh.f32 %v359_v42 }
 0x15d   : > { %v560_v43 = vpop.eup %559 }
 0x15e   : > { %v362_v44 = vadd.f32 %v560_v43, %v872_v9 }
 0x160   : > { %363 = vst [vmem:[%s274_s28] sm:$0xff] %v362_v44 }
 0x161   : > { %678 = shalt.err (!%p675_p9)
}
 0x162   : > { %496 = dma.vmem_to_hbm [thread:$0]  (%p826_p4), %s378_s29, 128, %s380_s30, %s365_s16  }
 0x163 PF: > { %s391_s22 = sand.u32 1, %s709_s18   ;;  %p929_p10 = scmp.ge.s32.totalorder %s721_s21, 2 }
 0x164   : > { %s392_s9 = scalar_lea.sflag [#allocation4], %s391_s22 }
 0x165   : > { %p510_p13 = pnand %p929_p10, %p830_p6 }
 0x167   : > { %p511_p11 = pneg %p510_p13 }
 0x169   : > { %704 = dma.done.wait (%p511_p11), %s392_s9, 128  }
 0x16a   : > { %706 = vsyncadd (%p511_p11), %s392_s9, 4294967168  ;;  %p19_p0 = scmp.ge.s32.totalorder %s800_s12, 4   ;;  %s930_s18 = smov %s713_s19 }
 0x16b   : > { %s931_s19 = smov %s717_s20  ;;  %s932_s20 = smov %s811_s15 }
 0x16c   : > { %s933_s21 = smov %s800_s12  ;;  %21 = sbr.rel (!%p19_p0) target bundleno = 6 (0x6), region = 93 }
 0x171   :  { %398 = vsyncpa [#allocation3], 1 }
 0x172   :  { %400 = vsyncpa [#allocation3 + $0x1], 1 }
 0x173   :  { %401 = vsyncpa [#allocation6], 1 }
 0x174   :  { %402 = vsyncpa [#allocation4], 1 }
 0x175   :  { %404 = vsyncpa [#allocation4 + $0x1], 1 }

</bundles_post_ra>
